<compile_context>
chip_gen: v5e
topology: v5e:2x2
jax: 0.10.0
libtpu: 0.0.40
codegen_flags: <defaults>
</compile_context>

<pallas_src>
import functools

import jax
import jax.numpy as jnp
from jax.experimental import pallas as pl
from jax.experimental.pallas import tpu as pltpu


# ----------------------------------------------------------------------------
# Plain-JAX parameter glue: fixed circuit unitary and quadratic form Q(w).
# ----------------------------------------------------------------------------
def _ry(theta):
    c, s = jnp.cos(theta / 2.0), jnp.sin(theta / 2.0)
    return jnp.array([[c, -s], [s, c]], dtype=jnp.float32)


_I2 = jnp.eye(2, dtype=jnp.float32)
# basis |q0 q1>, index = 2*q0 + q1 (PennyLane wire 0 = most significant bit)
_CNOT01 = jnp.array([[1, 0, 0, 0],
                     [0, 1, 0, 0],
                     [0, 0, 0, 1],
                     [0, 0, 1, 0]], dtype=jnp.float32)
_CNOT10 = jnp.array([[1, 0, 0, 0],
                     [0, 0, 0, 1],
                     [0, 0, 1, 0],
                     [0, 1, 0, 0]], dtype=jnp.float32)
_Z1 = jnp.diag(jnp.array([1.0, -1.0, 1.0, -1.0], dtype=jnp.float32))
# sign mask for Re(conj(d_j) d_k), d = [1, -i, -i, -1]
_PHASE = jnp.array([[1, 0, 0, -1],
                    [0, 1, 1, 0],
                    [0, 1, 1, 0],
                    [-1, 0, 0, 1]], dtype=jnp.float32)


def build_circuit_unitary(w):
    """Real 4x4 unitary of the post-embedding circuit (RY / CNOT only -> real)."""
    U = jnp.eye(4, dtype=jnp.float32)
    for i in range(3):
        U = jnp.kron(_ry(w[2 * i]), _I2) @ U      # RY on wire 0
        U = jnp.kron(_I2, _ry(w[2 * i + 1])) @ U  # RY on wire 1
        U = _CNOT01 @ U
        U = _CNOT10 @ U
    return U


def build_Q(w):
    U = build_circuit_unitary(w)
    M = U.T @ _Z1 @ U          # real symmetric
    return M * _PHASE          # Q = Re(D^H M D), symmetric


def build_q_coeffs(w):
    """10 unique coefficients of the symmetric quadratic form (off-diagonals pre-doubled)."""
    Q = build_Q(w).astype(jnp.float32)
    return jnp.stack([
        Q[0, 0], Q[1, 1], Q[2, 2], Q[3, 3],
        2.0 * Q[0, 1], 2.0 * Q[0, 2], 2.0 * Q[0, 3],
        2.0 * Q[1, 2], 2.0 * Q[1, 3], 2.0 * Q[2, 3],
    ])


# ----------------------------------------------------------------------------
# Pallas kernel: lane-dense per-sample trig + 10 VPU FMAs for v^T Q v.
# ----------------------------------------------------------------------------
def qnn_kernel(x_ref, q_ref, o_ref):
    # x_ref: VMEM (2, BT)  angles, batch along lanes
    # q_ref: SMEM (10,)    quadratic-form coefficients (diag x4, 2*offdiag x6)
    # o_ref: VMEM (1, BT)  expectation values
    h0 = x_ref[0:1, :] * 0.5                 # (1, BT)
    h1 = x_ref[1:2, :] * 0.5                 # (1, BT)
    c0 = jnp.cos(h0)
    s0 = jnp.sin(h0)
    c1 = jnp.cos(h1)
    s1 = jnp.sin(h1)

    v0 = c0 * c1
    v1 = c0 * s1
    v2 = s0 * c1
    v3 = s0 * s1

    out = (q_ref[0] * (v0 * v0) + q_ref[1] * (v1 * v1)
           + q_ref[2] * (v2 * v2) + q_ref[3] * (v3 * v3)
           + q_ref[4] * (v0 * v1) + q_ref[5] * (v0 * v2)
           + q_ref[6] * (v0 * v3) + q_ref[7] * (v1 * v2)
           + q_ref[8] * (v1 * v3) + q_ref[9] * (v2 * v3))
    o_ref[...] = out


def _round_up(n, m):
    return ((n + m - 1) // m) * m


@functools.partial(jax.jit, static_argnames=("batch_tile",))
def hybrid_qnn_forward(x, w, *, batch_tile=2048):
    """x: (B, 2) float32 angles; w: (6,) float32.  Returns (B,) float32 <Z1>."""
    x = jnp.asarray(x, jnp.float32)
    B = x.shape[0]

    # Lane-dense layout: batch rides the 128-lane axis.  Pad B up to a tile multiple
    # (padded rows are angle-0, harmless garbage that is sliced off at the end).
    tile = min(batch_tile, _round_up(B, 128))
    B_pad = _round_up(B, tile)
    x_t = jnp.zeros((2, B_pad), jnp.float32).at[:, :B].set(x.T)

    q_coef = build_q_coeffs(w)               # (10,) float32, goes to SMEM

    cost = pl.CostEstimate(
        flops=25 * B_pad,
        transcendentals=4 * B_pad,
        bytes_accessed=3 * 4 * B_pad + 10 * 4,
    )

    out = pl.pallas_call(
        qnn_kernel,
        out_shape=jax.ShapeDtypeStruct((1, B_pad), jnp.float32),
        grid_spec=pltpu.PrefetchScalarGridSpec(
            num_scalar_prefetch=0,
            grid=(B_pad // tile,),
            in_specs=[
                pl.BlockSpec((2, tile), lambda i: (0, i)),
                pl.BlockSpec(memory_space=pltpu.MemorySpace.SMEM),
            ],
            out_specs=pl.BlockSpec((1, tile), lambda i: (0, i)),
        ),
        compiler_params=pltpu.CompilerParams(
            dimension_semantics=("parallel",)),
        cost_estimate=cost,
    )(x_t, q_coef)
    return out[0, :B]


# ----------------------------------------------------------------------------
# Pure-JAX reference (full state-vector simulation, real/imag split) for checking.
# ----------------------------------------------------------------------------
def reference_forward(x, w):
    U = build_circuit_unitary(w)
    half = x * 0.5
    c, s = jnp.cos(half), jnp.sin(half)
    c0, c1, s0, s1 = c[:, 0], c[:, 1], s[:, 0], s[:, 1]
    zero = jnp.zeros_like(c0)
    # psi = RX(x0)|0> kron RX(x1)|0>
    re = jnp.stack([c0 * c1, zero, zero, -s0 * s1], axis=1)
    im = jnp.stack([zero, -c0 * s1, -s0 * c1, zero], axis=1)
    phi_re = re @ U.T
    phi_im = im @ U.T
    probs = phi_re ** 2 + phi_im ** 2
    z = jnp.array([1.0, -1.0, 1.0, -1.0], dtype=jnp.float32)
    return probs @ z


if __name__ == "__main__":
    B = 16
    key = jax.random.PRNGKey(0)
    kx, kw = jax.random.split(key)
    x = jax.random.uniform(kx, (B, 2), dtype=jnp.float32,
                           minval=-jnp.pi, maxval=jnp.pi)
    w = jax.random.normal(kw, (6,), dtype=jnp.float32)  # deterministic stand-in for nn.Parameter

    out = hybrid_qnn_forward(x, w)
    out = jax.block_until_ready(out)

    ref = jax.block_until_ready(reference_forward(x, w))
    assert out.shape == (B,)
    assert jnp.allclose(out, ref, atol=1e-5, rtol=1e-5), (out, ref)
    print("KERNEL_OK")
</pallas_src>

<mosaic_0001>
module attributes {stable_mosaic.version = 11 : i64} {
  func.func @qnn_kernel(%arg0: i32, %arg1: memref<2x128xf32, #tpu.memory_space<vmem>>, %arg2: memref<10xf32, #tpu.memory_space<smem>>, %arg3: memref<1x128xf32, #tpu.memory_space<vmem>>) attributes {dimension_semantics = [#tpu.dimension_semantics<parallel>], iteration_bounds = array<i64: 1>, scalar_prefetch = 0 : i64, scratch_operands = 0 : i64, tpu.core_type = #tpu.core_type<tc>, window_params = [{transform_indices = @transform_0, window_bounds = array<i64: 2, 128>}, {transform_indices = @transform_1, window_bounds = array<i64: 10>}, {transform_indices = @transform_2, window_bounds = array<i64: 1, 128>}]} {
    %c0 = arith.constant 0 : index
    %c0_0 = arith.constant 0 : index
    %0 = vector.load %arg1[%c0, %c0_0] : memref<2x128xf32, #tpu.memory_space<vmem>>, vector<1x128xf32>
    %cst = arith.constant 5.000000e-01 : f32
    %1 = vector.broadcast %cst : f32 to vector<1x128xf32>
    %2 = arith.mulf %0, %1 : vector<1x128xf32>
    %c1 = arith.constant 1 : index
    %c0_1 = arith.constant 0 : index
    %3 = vector.load %arg1[%c1, %c0_1] : memref<2x128xf32, #tpu.memory_space<vmem>>, vector<1x128xf32>
    %cst_2 = arith.constant 5.000000e-01 : f32
    %4 = vector.broadcast %cst_2 : f32 to vector<1x128xf32>
    %5 = arith.mulf %3, %4 : vector<1x128xf32>
    %6 = math.cos %2 : vector<1x128xf32>
    %7 = math.sin %2 : vector<1x128xf32>
    %8 = math.cos %5 : vector<1x128xf32>
    %9 = math.sin %5 : vector<1x128xf32>
    %10 = arith.mulf %6, %8 : vector<1x128xf32>
    %11 = arith.mulf %6, %9 : vector<1x128xf32>
    %12 = arith.mulf %7, %8 : vector<1x128xf32>
    %13 = arith.mulf %7, %9 : vector<1x128xf32>
    %c0_3 = arith.constant 0 : index
    %14 = memref.load %arg2[%c0_3] : memref<10xf32, #tpu.memory_space<smem>>
    %15 = arith.mulf %10, %10 : vector<1x128xf32>
    %16 = vector.broadcast %14 : f32 to vector<1x128xf32>
    %17 = arith.mulf %16, %15 : vector<1x128xf32>
    %c1_4 = arith.constant 1 : index
    %18 = memref.load %arg2[%c1_4] : memref<10xf32, #tpu.memory_space<smem>>
    %19 = arith.mulf %11, %11 : vector<1x128xf32>
    %20 = vector.broadcast %18 : f32 to vector<1x128xf32>
    %21 = arith.mulf %20, %19 : vector<1x128xf32>
    %22 = arith.addf %17, %21 : vector<1x128xf32>
    %c2 = arith.constant 2 : index
    %23 = memref.load %arg2[%c2] : memref<10xf32, #tpu.memory_space<smem>>
    %24 = arith.mulf %12, %12 : vector<1x128xf32>
    %25 = vector.broadcast %23 : f32 to vector<1x128xf32>
    %26 = arith.mulf %25, %24 : vector<1x128xf32>
    %27 = arith.addf %22, %26 : vector<1x128xf32>
    %c3 = arith.constant 3 : index
    %28 = memref.load %arg2[%c3] : memref<10xf32, #tpu.memory_space<smem>>
    %29 = arith.mulf %13, %13 : vector<1x128xf32>
    %30 = vector.broadcast %28 : f32 to vector<1x128xf32>
    %31 = arith.mulf %30, %29 : vector<1x128xf32>
    %32 = arith.addf %27, %31 : vector<1x128xf32>
    %c4 = arith.constant 4 : index
    %33 = memref.load %arg2[%c4] : memref<10xf32, #tpu.memory_space<smem>>
    %34 = arith.mulf %10, %11 : vector<1x128xf32>
    %35 = vector.broadcast %33 : f32 to vector<1x128xf32>
    %36 = arith.mulf %35, %34 : vector<1x128xf32>
    %37 = arith.addf %32, %36 : vector<1x128xf32>
    %c5 = arith.constant 5 : index
    %38 = memref.load %arg2[%c5] : memref<10xf32, #tpu.memory_space<smem>>
    %39 = arith.mulf %10, %12 : vector<1x128xf32>
    %40 = vector.broadcast %38 : f32 to vector<1x128xf32>
    %41 = arith.mulf %40, %39 : vector<1x128xf32>
    %42 = arith.addf %37, %41 : vector<1x128xf32>
    %c6 = arith.constant 6 : index
    %43 = memref.load %arg2[%c6] : memref<10xf32, #tpu.memory_space<smem>>
    %44 = arith.mulf %10, %13 : vector<1x128xf32>
    %45 = vector.broadcast %43 : f32 to vector<1x128xf32>
    %46 = arith.mulf %45, %44 : vector<1x128xf32>
    %47 = arith.addf %42, %46 : vector<1x128xf32>
    %c7 = arith.constant 7 : index
    %48 = memref.load %arg2[%c7] : memref<10xf32, #tpu.memory_space<smem>>
    %49 = arith.mulf %11, %12 : vector<1x128xf32>
    %50 = vector.broadcast %48 : f32 to vector<1x128xf32>
    %51 = arith.mulf %50, %49 : vector<1x128xf32>
    %52 = arith.addf %47, %51 : vector<1x128xf32>
    %c8 = arith.constant 8 : index
    %53 = memref.load %arg2[%c8] : memref<10xf32, #tpu.memory_space<smem>>
    %54 = arith.mulf %11, %13 : vector<1x128xf32>
    %55 = vector.broadcast %53 : f32 to vector<1x128xf32>
    %56 = arith.mulf %55, %54 : vector<1x128xf32>
    %57 = arith.addf %52, %56 : vector<1x128xf32>
    %c9 = arith.constant 9 : index
    %58 = memref.load %arg2[%c9] : memref<10xf32, #tpu.memory_space<smem>>
    %59 = arith.mulf %12, %13 : vector<1x128xf32>
    %60 = vector.broadcast %58 : f32 to vector<1x128xf32>
    %61 = arith.mulf %60, %59 : vector<1x128xf32>
    %62 = arith.addf %57, %61 : vector<1x128xf32>
    %c0_5 = arith.constant 0 : index
    %c0_6 = arith.constant 0 : index
    %63 = vector.load %arg3[%c0_5, %c0_6] : memref<1x128xf32, #tpu.memory_space<vmem>>, vector<1x128xf32>
    tpu.vector_store %arg3[%c0_5, %c0_6], %62 {strides = array<i32>} : memref<1x128xf32, #tpu.memory_space<vmem>>, vector<1x128xf32>,
    return
  }
  func.func @transform_0(%arg0: i32) -> (i32, i32) {
    %c0_i32 = arith.constant 0 : i32
    %c0_i32_0 = arith.constant 0 : i32
    return %c0_i32, %arg0 : i32, i32
  }
  func.func @transform_1(%arg0: i32) -> i32 {
    %c0_i32 = arith.constant 0 : i32
    %c0_i32_0 = arith.constant 0 : i32
    return %c0_i32 : i32
  }
  func.func @transform_2(%arg0: i32) -> (i32, i32) {
    %c0_i32 = arith.constant 0 : i32
    %c0_i32_0 = arith.constant 0 : i32
    return %c0_i32, %arg0 : i32, i32
  }
}

</mosaic_0001>

<bundles_post_ra>
// kernel: hybrid_qnn_forward.1
= control target key start
LH: loop header
LB: loop body
LE: loop exit
PB: predicated region body
PF: predicated region fallthrough
CT: control target
= control target key end

     0   :  { %7 = vsyncpa [#allocation3], 0  ;;  %s748_s12 = smov [#allocation2]   ;;  %s972_s0 = inlined_call_operand.vmem [shape: f32[2,128], index: 0, kind: input, shape index: {}]   ;;  %s973_s1 = inlined_call_operand.vmem [shape: f32[10], index: 1, kind: input, shape index: {}]   ;;  %s974_s2 = inlined_call_operand.vmem [shape: f32[1,128], index: 2, kind: output, shape index: {}]  }
   0x1   :  { %s15_s11 = sshll.u32 %s973_s1, 4  ;;  %s16_s11 = int_to_ptr.vmem [resolvable:$true] %s15_s11 }
   0x2   :  { %18 = dma.vmem_to_smem %s16_s11, 16, %s748_s12, [#allocation3]  }
   0x3   :  { %746 = dma.done.wait [#allocation3], 16  }
   0x4   :  { %747 = vsyncadd [#allocation3], 4294967280 }
   0x5   :  { %23 = sfence }
   0x6   :  { %v24_v0 = vld [vmem:[%s972_s0] sm:$0x1]  ;;  %v26_v1 = vld [vmem:[%s972_s0 + $0x1] sm:$0x1]  ;;  %v749_v25 = vmov 683565275  }
   0x7   :  { %v780_v2 = vmul.f32 0.5, %v24_v0  ;;  %v782_v3 = vmul.f32 0.5, %v26_v1  ;;  %v750_v27 = vmov 2475754826   ;;  %v751_v29 = vmov 2131351028  }
   0x8   :  { %v752_v31 = vmov 2102212464   ;;  %v753_v33 = vmov 920167782   ;;  %v754_v42 = vmov 1326507024  }
   0x9   :  { %v28_v4 = vand.u32 2147483647, %v780_v2  ;;  %v31_v5 = vand.u32 2139095040, %v780_v2  ;;  %v337_v6 = vand.u32 2147483647, %v782_v3  ;;  %v340_v7 = vand.u32 2139095040, %v782_v3 }
   0xa   :  { %s942_s0 = sld [smem:[#allocation2]] }
   0xb   :  { %v32_v8 = vshrl.u32 %v31_v5, 23  ;;  %v35_v9 = vand.u32 8388607, %v28_v4  ;;  %v341_v10 = vshrl.u32 %v340_v7, 23  ;;  %v344_v14 = vand.u32 8388607, %v337_v6 }
   0xc   :  { %s944_s1 = sld [smem:[#allocation2 + $0x1]] }
   0xd   :  { %v705_v11 = vadd.s32 4294967169, %v32_v8  ;;  %v36_v12 = vor.u32 8388608, %v35_v9  ;;  %v711_v13 = vadd.s32 4294967169, %v341_v10  ;;  %v345_v19 = vor.u32 8388608, %v344_v14  ;;  %s947_s17 = sld [smem:[#allocation2 + $0x2]] }
   0xe   :  { %s951_s18 = sld [smem:[#allocation2 + $0x3]] }
   0xf   :  { %v38_v15 = vadd.s32 1, %v705_v11  ;;  %v347_v16 = vadd.s32 1, %v711_v13  ;;  %v792_v18 = vshll.u32 %v36_v12, 8  ;;  %v802_v36 = vshll.u32 %v345_v19, 8  ;;  %s958_s19 = sld [smem:[#allocation2 + $0x4]] }
  0x10   :  { %s961_s20 = sld [smem:[#allocation2 + $0x5]] }
  0x11   :  { %vm39_vm0 = vcmp.gt.s32.totalorder %v38_v15, 0  ;;  %vm348_vm1 = vcmp.gt.s32.totalorder %v347_v16, 0  ;;  %v77_v35 = vand.u32 65535, %v792_v18  ;;  %v78_v40 = vshrl.u32 %v792_v18, 16  ;;  %s722_s21 = sld [smem:[#allocation2 + $0x6]] }
  0x12   :  { %v40_v17 = vsel %vm39_vm0, %v38_v15, 0  ;;  %v349_v21 = vsel %vm348_vm1, %v347_v16, 0  ;;  %s723_s22 = sld [smem:[#allocation2 + $0x7]] }
  0x13   :  { %v42_v20 = vand.u32 31, %v40_v17  ;;  %v794_v22 = vshrl.u32 %v40_v17, 5  ;;  %v796_v23 = vand.u32 31, %v349_v21  ;;  %v820_v53 = vshrl.u32 %v349_v21, 5  ;;  %s724_s23 = sld [smem:[#allocation2 + $0x8]] }
  0x14   :  { %s725_s24 = sld [smem:[#allocation2 + $0x9]] }
  0x15   :  { %v43_v24 = vsub.s32 32, %v42_v20  ;;  %v45_v26 = vshll.u32 %v749_v25, %v42_v20  ;;  %v48_v28 = vshll.u32 %v750_v27, %v42_v20  ;;  %v51_v30 = vshll.u32 %v751_v29, %v42_v20 }
  0x16   :  { %v54_v32 = vshll.u32 %v752_v31, %v42_v20  ;;  %v57_v34 = vshll.u32 %v753_v33, %v42_v20  ;;  %vm60_vm2 = vcmp.lt.s32.totalorder %v794_v22, 1  ;;  %vm63_vm3 = vcmp.lt.s32.totalorder %v794_v22, 4 }
  0x17   :  { %v46_v37 = vshrl.u32 %v750_v27, %v43_v24  ;;  %v49_v38 = vshrl.u32 %v751_v29, %v43_v24  ;;  %v52_v39 = vshrl.u32 %v752_v31, %v43_v24  ;;  %v55_v41 = vshrl.u32 %v753_v33, %v43_v24 }
  0x18   :  { %v58_v43 = vshrl.u32 %v754_v42, %v43_v24  ;;  %v811_v47 = vsub.s32 32, %v796_v23  ;;  %v44_v48 = vshrl.u32 %v749_v25, %v43_v24  ;;  %vm62_vm4 = vcmp.lt.s32.totalorder %v794_v22, 3 }
  0x19   :  { %v47_v44 = vor.u32 %v46_v37, %v45_v26  ;;  %v50_v45 = vor.u32 %v49_v38, %v48_v28  ;;  %v53_v46 = vor.u32 %v52_v39, %v51_v30  ;;  %v56_v49 = vor.u32 %v55_v41, %v54_v32 }
  0x1a   :  { %v59_v50 = vor.u32 %v58_v43, %v57_v34  ;;  %vm61_vm5 = vcmp.lt.s32.totalorder %v794_v22, 2  ;;  %v354_v56 = vshll.u32 %v749_v25, %v796_v23  ;;  %v357_v57 = vshll.u32 %v750_v27, %v796_v23 }
  0x1b   :  { %v68_v51 = vsel %vm60_vm2, %v47_v44, %v50_v45  ;;  %v72_v52 = vsel %vm60_vm2, %v50_v45, %v53_v46  ;;  %v69_v54 = vsel %vm63_vm3, %v56_v49, 920167782  ;;  %v65_v58 = vsel %vm63_vm3, %v53_v46, 2102212464 }
  0x1c   :  { %v73_v55 = vsel %vm63_vm3, %v59_v50, 1326507024  ;;  %v70_v59 = vsel %vm62_vm4, %v53_v46, %v69_v54  ;;  %v355_v61 = vshrl.u32 %v750_v27, %v811_v47  ;;  %v64_v62 = vsel %vm60_vm2, %v44_v48, %v47_v44 }
  0x1d   :  { %v74_v60 = vsel %vm62_vm4, %v56_v49, %v73_v55  ;;  %v71_v63 = vsel %vm61_vm5, %v68_v51, %v70_v59  ;;  %v358_v1 = vshrl.u32 %v751_v29, %v811_v47  ;;  %v66_v10 = vsel %vm62_vm4, %v50_v45, %v65_v58 }
  0x1e   :  { %v75_v0 = vsel %vm61_vm5, %v72_v52, %v74_v60  ;;  %v101_v8 = vand.u32 65535, %v71_v63  ;;  %v102_v9 = vshrl.u32 %v71_v63, 16  ;;  %v845_v11 = vor.u32 %v355_v61, %v354_v56 }
  0x1f   :  { %v79_v5 = vand.u32 65535, %v75_v0  ;;  %v80_v7 = vshrl.u32 %v75_v0, 16  ;;  %v847_v12 = vor.u32 %v358_v1, %v357_v57  ;;  %v360_v13 = vshll.u32 %v751_v29, %v796_v23 }
  0x20   :  { %v361_v17 = vshrl.u32 %v752_v31, %v811_v47  ;;  %v103_v20 = vmul.u32 %v101_v8, %v77_v35  ;;  %v104_v21 = vmul.u32 %v102_v9, %v77_v35  ;;  %v105_v24 = vmul.u32 %v101_v8, %v78_v40 }
  0x21   :  { %v81_v14 = vmul.u32 %v79_v5, %v77_v35  ;;  %v82_v15 = vmul.u32 %v80_v7, %v77_v35  ;;  %v83_v16 = vmul.u32 %v79_v5, %v78_v40  ;;  %v84_v19 = vmul.u32 %v80_v7, %v78_v40 }
  0x22   :  { %v106_v30 = vmul.u32 %v102_v9, %v78_v40  ;;  %v107_v34 = vshll.u32 %v104_v21, 16  ;;  %v108_v37 = vshrl.u32 %v104_v21, 16  ;;  %v109_v38 = vshll.u32 %v105_v24, 16 }
  0x23   :  { %v85_v26 = vshll.u32 %v82_v15, 16  ;;  %v86_v27 = vshrl.u32 %v82_v15, 16  ;;  %v87_v28 = vshll.u32 %v83_v16, 16  ;;  %v88_v32 = vshrl.u32 %v83_v16, 16 }
  0x24   :  { %v110_v39 = vshrl.u32 %v105_v24, 16  ;;  %v363_v41 = vshll.u32 %v752_v31, %v796_v23  ;;  %v755_v43 = vmov 0   ;;  %vm111_vm7 = vc.u32 %v103_v20, %v107_v34 }
  0x25   :  { %vm89_vm6 = vc.u32 %v81_v14, %v85_v26  ;;  %v91_v29 = vadd.s32 %v85_v26, %v81_v14  ;;  %v113_v35 = vadd.s32 %v107_v34, %v103_v20  ;;  %v364_v45 = vshrl.u32 %v753_v33, %v811_v47 }
  0x26   :  { %v90_v44 = vsel %vm89_vm6, 1, %v755_v43  ;;  %v112_v40 = vsel %vm111_vm7, 1, %v755_v43  ;;  %v366_v48 = vshll.u32 %v753_v33, %v796_v23  ;;  %v362_v31 = vor.u32 %v361_v17, %v360_v13 }
  0x27   :  { %v92_v46 = vadd.s32 %v90_v44, %v84_v19  ;;  %vm93_vm8 = vc.u32 %v91_v29, %v87_v28  ;;  %v114_v50 = vadd.s32 %v112_v40, %v106_v30  ;;  %vm115_vm9 = vc.u32 %v113_v35, %v109_v38 }
  0x28   :  { %v94_v49 = vsel %vm93_vm8, 1, %v755_v43  ;;  %v116_v52 = vsel %vm115_vm9, 1, %v755_v43  ;;  %v365_v54 = vor.u32 %v364_v45, %v363_v41  ;;  %v367_v55 = vshrl.u32 %v754_v42, %v811_v47 }
  0x29   :  { %v96_v51 = vadd.s32 %v94_v49, %v92_v46  ;;  %v864_v56 = vadd.s32 %v113_v35, %v109_v38  ;;  %v118_v57 = vadd.s32 %v116_v52, %v114_v50  ;;  %vm369_vm10 = vcmp.lt.s32.totalorder %v820_v53, 1 }
  0x2a   :  { %vm371_vm11 = vcmp.lt.s32.totalorder %v820_v53, 3  ;;  %v368_v33 = vor.u32 %v367_v55, %v366_v48  ;;  %vm370_vm12 = vcmp.lt.s32.totalorder %v820_v53, 2  ;;  %vm372_vm13 = vcmp.lt.s32.totalorder %v820_v53, 4 }
  0x2b   :  { %v97_v23 = vadd.s32 %v96_v51, %v86_v27  ;;  %v67_v58 = vsel %vm61_vm5, %v64_v62, %v66_v10  ;;  %v119_v59 = vadd.s32 %v118_v57, %v108_v37  ;;  %v377_v42 = vsel %vm369_vm10, %v845_v11, %v847_v12 }
  0x2c   :  { %v378_v60 = vsel %vm372_vm13, %v365_v54, 920167782  ;;  %v381_v0 = vsel %vm369_vm10, %v847_v12, %v362_v31  ;;  %v386_v22 = vand.u32 65535, %v802_v36  ;;  %v382_v5 = vsel %vm372_vm13, %v368_v33, 1326507024 }
  0x2d   :  { %v878_v61 = vadd.s32 %v97_v23, %v88_v32  ;;  %v379_v63 = vsel %vm371_vm11, %v362_v31, %v378_v60  ;;  %v120_v62 = vadd.s32 %v119_v59, %v110_v39  ;;  %v387_v7 = vshrl.u32 %v802_v36, 16 }
  0x2e   :  { %v380_v1 = vsel %vm370_vm12, %v377_v42, %v379_v63  ;;  %v121_v8 = vmul.u32 %v792_v18, %v67_v58  ;;  %v383_v9 = vsel %vm371_vm11, %v365_v54, %v382_v5  ;;  %v353_v20 = vshrl.u32 %v749_v25, %v811_v47 }
  0x2f   :  { %vm123_vm14 = vc.u32 %v878_v61, %v864_v56  ;;  %v410_v10 = vand.u32 65535, %v380_v1  ;;  %v124_v13 = vadd.s32 1, %v120_v62  ;;  %v384_v14 = vsel %vm370_vm12, %v381_v0, %v383_v9 }
  0x30   :  { %v411_v15 = vshrl.u32 %v380_v1, 16  ;;  %v388_v16 = vand.u32 65535, %v384_v14  ;;  %v389_v17 = vshrl.u32 %v384_v14, 16  ;;  %v374_v37 = vsel %vm372_vm13, %v362_v31, 2102212464 }
  0x31   :  { %v125_v19 = vsel %vm123_vm14, %v124_v13, %v120_v62  ;;  %v414_v18 = vmul.u32 %v410_v10, %v387_v7  ;;  %v412_v28 = vmul.u32 %v410_v10, %v386_v22  ;;  %v373_v39 = vsel %vm369_vm10, %v353_v20, %v845_v11 }
  0x32   :  { %v413_v21 = vmul.u32 %v411_v15, %v386_v22  ;;  %v126_v24 = vadd.s32 %v125_v19, %v121_v8  ;;  %v390_v26 = vmul.u32 %v388_v16, %v386_v22  ;;  %v391_v27 = vmul.u32 %v389_v17, %v386_v22 }
  0x33   :  { %v392_v30 = vmul.u32 %v388_v16, %v387_v7  ;;  %v393_v38 = vmul.u32 %v389_v17, %v387_v7  ;;  %v415_v25 = vmul.u32 %v411_v15, %v387_v7  ;;  %v418_v47 = vshll.u32 %v414_v18, 16 }
  0x34   :  { %v416_v32 = vshll.u32 %v413_v21, 16  ;;  %v127_v34 = vadd.s32 536870912, %v126_v24  ;;  %v394_v29 = vshll.u32 %v391_v27, 16  ;;  %v375_v45 = vsel %vm371_vm11, %v847_v12, %v374_v37 }
  0x35   :  { %v396_v41 = vshll.u32 %v392_v30, 16  ;;  %v395_v11 = vshrl.u32 %v391_v27, 16  ;;  %v417_v51 = vshrl.u32 %v413_v21, 16  ;;  %v397_v55 = vshrl.u32 %v392_v30, 16 }
  0x36   :  { %v905_v44 = vshrl.u32 %v127_v34, 30  ;;  %vm398_vm15 = vc.u32 %v390_v26, %v394_v29  ;;  %v400_v35 = vadd.s32 %v394_v29, %v390_v26  ;;  %vm420_vm0 = vc.u32 %v412_v28, %v416_v32 }
  0x37   :  { %v399_v46 = vsel %vm398_vm15, 1, %v755_v43  ;;  %v421_v40 = vsel %vm420_vm0, 1, %v755_v43  ;;  %v422_v48 = vadd.s32 %v416_v32, %v412_v28  ;;  %v419_v23 = vshrl.u32 %v414_v18, 16 }
  0x38   :  { %v129_v49 = vshll.u32 %v905_v44, 30  ;;  %v401_v50 = vadd.s32 %v399_v46, %v393_v38  ;;  %vm402_vm1 = vc.u32 %v400_v35, %v396_v41  ;;  %v423_v52 = vadd.s32 %v421_v40, %v415_v25 }
  0x39   :  { %v403_v31 = vsel %vm402_vm1, 1, %v755_v43  ;;  %vm424_vm2 = vc.u32 %v422_v48, %v418_v47  ;;  %v426_v42 = vadd.s32 %v422_v48, %v418_v47  ;;  %v376_v60 = vsel %vm370_vm12, %v373_v39, %v375_v45 }
  0x3a   :  { %v130_v54 = vsub.s32 %v126_v24, %v129_v49  ;;  %v405_v57 = vadd.s32 %v403_v31, %v401_v50  ;;  %v425_v12 = vsel %vm424_vm2, 1, %v755_v43  ;;  %v430_v5 = vmul.u32 %v802_v36, %v376_v60 }
  0x3b   :  { %v427_v33 = vadd.s32 %v425_v12, %v423_v52  ;;  %v122_v43 = vadd.s32 %v864_v56, %v878_v61  ;;  %vm30_vm7 = vcmp.lt.s32.totalorder %v780_v2, 0  ;;  %vm923_vm8 = vcmp.le.f32.partialorder %v28_v4, 0.7853982 }
  0x3c   :  { %vm131_vm3 = vcmp.lt.s32.totalorder %v130_v54, 0  ;;  %v132_v58 = vsub.s32 0, %v130_v54  ;;  %v406_v59 = vadd.s32 %v405_v57, %v395_v11  ;;  %vm339_vm10 = vcmp.lt.s32.totalorder %v782_v3, 0 }
  0x3d   :  { %v428_v63 = vadd.s32 %v427_v33, %v417_v51  ;;  %vm338_vm11 = vcmp.le.f32.partialorder %v337_v6, 0.7853982 }
  0x3e   :  { %v133_v0 = vsel %vm131_vm3, %v132_v58, %v130_v54  ;;  %v407_v22 = vadd.s32 %v406_v59, %v397_v55 }
  0x3f   :  { %v134_v62 = vclz %v133_v0  ;;  %v429_v1 = vadd.s32 %v428_v63, %v419_v23 }
  0x40   :  { %vm432_vm4 = vc.u32 %v407_v22, %v426_v42  ;;  %v431_v25 = vadd.s32 %v426_v42, %v407_v22 }
  0x41   :  { %v706_v7 = vadd.s32 4294967294, %v134_v62  ;;  %v433_v8 = vadd.s32 1, %v429_v1 }
  0x43   :  { %vm707_vm5 = vcmp.lt.s32.totalorder %v706_v7, 0  ;;  %v434_v9 = vsel %vm432_vm4, %v433_v8, %v429_v1  ;;  %vm171_vm4 = vweird.f32 %v780_v2 }
  0x44   :  { %v137_v10 = vsel %vm707_vm5, 0, %v706_v7  ;;  %v435_v13 = vadd.s32 %v434_v9, %v430_v5 }
  0x45   :  { %v138_v14 = vsub.s32 32, %v137_v10  ;;  %v139_v53 = vshll.u32 %v130_v54, %v137_v10  ;;  %v142_v15 = vsub.s32 4294967266, %v137_v10  ;;  %v152_v54 = vsub.s32 4, %v905_v44 }
  0x46   :  { %v436_v16 = vadd.s32 536870912, %v435_v13 }
  0x47   :  { %v140_v17 = vshrl.u32 %v122_v43, %v138_v14  ;;  %v143_v19 = vadd.s32 127, %v142_v15  ;;  %v153_v58 = vsel %vm30_vm7, %v152_v54, %v905_v44 }
  0x48   :  { %v437_v20 = vshrl.u32 %v436_v16, 30  ;;  %v155_v22 = vsel %vm923_vm8, 0, %v153_v58 }
  0x49   :  { %v141_v21 = vor.u32 %v140_v17, %v139_v53  ;;  %v144_v18 = vshll.u32 %v143_v19, 23  ;;  %v326_v44 = vadd.s32 3, %v155_v22  ;;  %v172_v53 = vand.u32 3, %v155_v22 }
  0x4a   :  { %v438_v36 = vshll.u32 %v437_v20, 30  ;;  %v461_v60 = vsub.s32 4, %v437_v20 }
  0x4b   :  { %v145_v24 = vor.u32 4788187, %v144_v18  ;;  %v148_v26 = vcvt.s32.f32 %v141_v21  ;;  %v327_v16 = vand.u32 3, %v326_v44  ;;  %vm177_vm12 = vcmp.eq.s32.totalorder %v172_v53, 2 }
  0x4c   :  { %v439_v27 = vsub.s32 %v435_v13, %v438_v36  ;;  %v462_v5 = vsel %vm339_vm10, %v461_v60, %v437_v20  ;;  %vm174_vm14 = vcmp.eq.s32.totalorder %v172_v53, 0  ;;  %vm173_vm0 = vcmp.lt.s32.totalorder %v172_v53, 2 }
  0x4d   :  { %v146_v28 = vand.u32 2147483647, %v145_v24  ;;  %v464_v9 = vsel %vm338_vm11, 0, %v462_v5  ;;  %vm332_vm13 = vcmp.eq.s32.totalorder %v327_v16, 2  ;;  %vm329_vm15 = vcmp.eq.s32.totalorder %v327_v16, 0 }
  0x4e   :  { %vm440_vm6 = vcmp.lt.s32.totalorder %v439_v27, 0  ;;  %v441_v56 = vsub.s32 0, %v439_v27  ;;  %v635_v19 = vadd.s32 3, %v464_v9  ;;  %vm328_vm1 = vcmp.lt.s32.totalorder %v327_v16, 2 }
  0x4f   :  { %v149_v61 = vmul.f32 %v148_v26, %v146_v28 }
  0x50   :  { %v442_v30 = vsel %vm440_vm6, %v441_v56, %v439_v27  ;;  %v636_v28 = vand.u32 3, %v635_v19  ;;  %v691_v19 = vstv %s724_s23 }
  0x51   :  { %v150_v34 = vxor.u32 2147483648, %v149_v61  ;;  %v443_v37 = vclz %v442_v30 }
  0x52   :  { %vm641_vm3 = vcmp.eq.s32.totalorder %v636_v28, 2 }
  0x53   :  { %v151_v38 = vsel %vm30_vm7, %v150_v34, %v149_v61  ;;  %v712_v29 = vadd.s32 4294967294, %v443_v37  ;;  %vm638_vm7 = vcmp.eq.s32.totalorder %v636_v28, 0 }
  0x54   :  { %v154_v39 = vsel %vm923_vm8, %v780_v2, %v151_v38  ;;  %vm637_vm8 = vcmp.lt.s32.totalorder %v636_v28, 2  ;;  %v652_v2 = vstv %s942_s0 }
  0x55   :  { %v156_v41 = vmul.f32 %v154_v39, %v154_v39  ;;  %vm713_vm9 = vcmp.lt.s32.totalorder %v712_v29, 0 }
  0x56   :  { %v446_v47 = vsel %vm713_vm9, 0, %v712_v29  ;;  %vm480_vm9 = vweird.f32 %v782_v3 }
  0x57   :  { %v157_v35 = vmul.f32 -0.001358992, %v156_v41  ;;  %v164_v45 = vmul.f32 -0.00019511016, %v156_v41  ;;  %v447_v4 = vsub.s32 32, %v446_v47  ;;  %v448_v46 = vshll.u32 %v439_v27, %v446_v47 }
  0x58   :  { %v451_v40 = vsub.s32 4294967266, %v446_v47  ;;  %v481_v27 = vand.u32 3, %v464_v9 }
  0x59   :  { %v165_v48 = vadd.f32 0.008332121, %v164_v45  ;;  %v449_v49 = vshrl.u32 %v431_v25, %v447_v4  ;;  %v158_v50 = vadd.f32 0.041655596, %v157_v35 }
  0x5a   :  { %v452_v11 = vadd.s32 127, %v451_v40  ;;  %vm486_vm2 = vcmp.eq.s32.totalorder %v481_v27, 2  ;;  %vm482_vm5 = vcmp.lt.s32.totalorder %v481_v27, 2  ;;  %vm483_vm6 = vcmp.eq.s32.totalorder %v481_v27, 0 }
  0x5b   :  { %v450_v31 = vor.u32 %v449_v49, %v448_v46  ;;  %v166_v51 = vmul.f32 %v165_v48, %v156_v41  ;;  %v159_v12 = vmul.f32 %v158_v50, %v156_v41 }
  0x5c   :  { %v453_v52 = vshll.u32 %v452_v11, 23 }
  0x5d   :  { %v457_v57 = vcvt.s32.f32 %v450_v31  ;;  %v167_v23 = vadd.f32 -0.16666654, %v166_v51  ;;  %v160_v42 = vadd.f32 -0.4999988, %v159_v12  ;;  %v661_v12 = vstv %s947_s17 }
  0x5e   :  { %v454_v55 = vor.u32 4788187, %v453_v52 }
  0x5f   :  { %v168_v63 = vmul.f32 %v167_v23, %v156_v41  ;;  %v161_v1 = vmul.f32 %v160_v42, %v156_v41  ;;  %v666_v42 = vstv %s951_s18 }
  0x60   :  { %v455_v33 = vand.u32 2147483647, %v454_v55 }
  0x61   :  { %v169_v8 = vadd.f32 1.0, %v168_v63  ;;  %v162_v14 = vadd.f32 1.0, %v161_v1 }
  0x62   :  { %v458_v59 = vmul.f32 %v457_v57, %v455_v33  ;;  %v656_v57 = vstv %s944_s1 }
  0x63   :  { %v170_v15 = vmul.f32 %v169_v8, %v154_v39  ;;  %v178_v36 = vxor.u32 2147483648, %v162_v14  ;;  %v676_v8 = vstv %s961_s20 }
  0x64   :  { %v459_v0 = vxor.u32 2147483648, %v458_v59 }
  0x65   :  { %v175_v20 = vxor.u32 2147483648, %v170_v15  ;;  %v179_v30 = vsel %vm177_vm12, %v178_v36, %v170_v15  ;;  %v334_v32 = vsel %vm332_vm13, %v178_v36, %v170_v15  ;;  %v686_v15 = vstv %s723_s22 }
  0x66   :  { %v460_v62 = vsel %vm339_vm10, %v459_v0, %v458_v59 }
  0x67   :  { %v463_v7 = vsel %vm338_vm11, %v782_v3, %v460_v62  ;;  %v176_v34 = vsel %vm174_vm14, %v162_v14, %v175_v20  ;;  %v331_v37 = vsel %vm329_vm15, %v162_v14, %v175_v20  ;;  %v671_v62 = vstv %s958_s19 }
  0x68   :  { %v465_v43 = vmul.f32 %v463_v7, %v463_v7  ;;  %v180_v25 = vsel %vm173_vm0, %v176_v34, %v179_v30  ;;  %v335_v47 = vsel %vm328_vm1, %v331_v37, %v334_v32  ;;  %v696_v20 = vstv %s725_s24 }
  0x69   :  { %v181_v46 = vsel %vm171_vm4, nan, %v180_v25  ;;  %v336_v40 = vsel %vm171_vm4, nan, %v335_v47 }
  0x6a   :  { %v466_v10 = vmul.f32 -0.001358992, %v465_v43  ;;  %v473_v13 = vmul.f32 -0.00019511016, %v465_v43 }
  0x6c   :  { %v467_v6 = vadd.f32 0.041655596, %v466_v10  ;;  %v474_v17 = vadd.f32 0.008332121, %v473_v13  ;;  %v681_v10 = vstv %s722_s21 }
  0x6e   :  { %v468_v21 = vmul.f32 %v467_v6, %v465_v43  ;;  %v475_v18 = vmul.f32 %v474_v17, %v465_v43 }
  0x70   :  { %v469_v24 = vadd.f32 -0.4999988, %v468_v21  ;;  %v476_v26 = vadd.f32 -0.16666654, %v475_v18 }
  0x72   :  { %v470_v56 = vmul.f32 %v469_v24, %v465_v43  ;;  %v477_v61 = vmul.f32 %v476_v26, %v465_v43 }
  0x74   :  { %v471_v38 = vadd.f32 1.0, %v470_v56  ;;  %v478_v29 = vadd.f32 1.0, %v477_v61 }
  0x76   :  { %v479_v39 = vmul.f32 %v478_v29, %v463_v7  ;;  %v487_v41 = vxor.u32 2147483648, %v471_v38 }
  0x78   :  { %v484_v35 = vxor.u32 2147483648, %v479_v39  ;;  %v488_v45 = vsel %vm486_vm2, %v487_v41, %v479_v39  ;;  %v643_v4 = vsel %vm641_vm3, %v487_v41, %v479_v39 }
  0x7a   :  { %v485_v48 = vsel %vm483_vm6, %v471_v38, %v484_v35  ;;  %v640_v49 = vsel %vm638_vm7, %v471_v38, %v484_v35 }
  0x7b   :  { %v489_v11 = vsel %vm482_vm5, %v485_v48, %v488_v45  ;;  %v644_v50 = vsel %vm637_vm8, %v640_v49, %v643_v4 }
  0x7c   :  { %v490_v31 = vsel %vm480_vm9, nan, %v489_v11  ;;  %v645_v51 = vsel %vm480_vm9, nan, %v644_v50 }
  0x7d   :  { %v646_v3 = vmul.f32 %v490_v31, %v181_v46  ;;  %v647_v52 = vmul.f32 %v645_v51, %v181_v46  ;;  %v648_v54 = vmul.f32 %v490_v31, %v336_v40  ;;  %v649_v55 = vmul.f32 %v645_v51, %v336_v40 }
  0x7f   :  { %v651_v23 = vmul.f32 %v646_v3, %v646_v3  ;;  %v655_v33 = vmul.f32 %v647_v52, %v647_v52  ;;  %v660_v58 = vmul.f32 %v648_v54, %v648_v54  ;;  %v665_v59 = vmul.f32 %v649_v55, %v649_v55 }
  0x80   :  { %v670_v22 = vmul.f32 %v647_v52, %v646_v3  ;;  %v675_v7 = vmul.f32 %v648_v54, %v646_v3  ;;  %v680_v9 = vmul.f32 %v649_v55, %v646_v3  ;;  %v685_v53 = vmul.f32 %v648_v54, %v647_v52 }
  0x81   :  { %v653_v60 = vmul.f32 %v652_v2, %v651_v23  ;;  %v657_v63 = vmul.f32 %v656_v57, %v655_v33  ;;  %v662_v0 = vmul.f32 %v661_v12, %v660_v58  ;;  %v667_v5 = vmul.f32 %v666_v42, %v665_v59 }
  0x82   :  { %v672_v43 = vmul.f32 %v671_v62, %v670_v22  ;;  %v677_v14 = vmul.f32 %v676_v8, %v675_v7  ;;  %v682_v6 = vmul.f32 %v681_v10, %v680_v9  ;;  %v690_v17 = vmul.f32 %v649_v55, %v647_v52 }
  0x83   :  { %v658_v1 = vadd.f32 %v657_v63, %v653_v60  ;;  %v687_v18 = vmul.f32 %v686_v15, %v685_v53  ;;  %v695_v36 = vmul.f32 %v649_v55, %v648_v54 }
  0x84   :  { %v692_v26 = vmul.f32 %v691_v19, %v690_v17 }
  0x85   :  { %v663_v44 = vadd.f32 %v662_v0, %v658_v1  ;;  %v697_v28 = vmul.f32 %v696_v20, %v695_v36 }
  0x87   :  { %v668_v13 = vadd.f32 %v667_v5, %v663_v44 }
  0x89   :  { %v673_v16 = vadd.f32 %v672_v43, %v668_v13 }
  0x8b   :  { %v678_v21 = vadd.f32 %v677_v14, %v673_v16 }
  0x8d   :  { %v683_v24 = vadd.f32 %v682_v6, %v678_v21 }
  0x8f   :  { %v688_v27 = vadd.f32 %v687_v18, %v683_v24 }
  0x91   :  { %v693_v56 = vadd.f32 %v692_v26, %v688_v27 }
  0x93   :  { %v698_v61 = vadd.f32 %v697_v28, %v693_v56 }
  0x95   :  { %699 = vst [vmem:[%s974_s2] sm:$0x1] %v698_v61 }
  0x96   :  { %704 = vsyncpa [#allocation3], 1 }

</bundles_post_ra>
